<compile_context>
chip_gen: v6e
topology: v6e:2x2x1
jax: 0.10.0
libtpu: 0.0.40
codegen_flags: <defaults>
</compile_context>

<pallas_src>
import math
import jax
import jax.numpy as jnp
from jax import lax
from jax.experimental import pallas as pl
from jax.experimental.pallas import tpu as pltpu


def gaussian_action_kernel(x_ref, w_ref, b_ref, logstd_ref,
                           mean_ref, std_ref, acc_ref):
    k = pl.program_id(2)

    @pl.when(k == 0)
    def _():
        acc_ref[...] = jnp.zeros_like(acc_ref)

    # x: (tm, tk), w: (tn, tk)  -> contract last dims of both (no transpose).
    acc_ref[...] += lax.dot_general(
        x_ref[...], w_ref[...],
        dimension_numbers=(((1,), (1,)), ((), ())),
        preferred_element_type=jnp.float32)

    @pl.when(k == pl.num_programs(2) - 1)
    def _():
        mean = acc_ref[...] + b_ref[...]                       # (tm,tn) + (1,tn)
        mean_ref[...] = mean.astype(mean_ref.dtype)
        std = jnp.exp(logstd_ref[...])                         # (1, tn), EUP
        std_ref[...] = jnp.broadcast_to(std, std_ref.shape).astype(std_ref.dtype)


def _round_up(v, m):
    return (v + m - 1) // m * m


def gaussian_action(x, weight, bias, logstd, *, tm=128, tn=128, tk=256):
    """Returns (mean, std) with mean = x @ W.T + b, std = exp(logstd) broadcast."""
    B, In = x.shape
    Out = weight.shape[0]

    # Lane-dense padding: last dims to multiples of 128, batch to multiple of 8.
    Bp = _round_up(B, 8)
    Inp = _round_up(In, 128)
    Outp = _round_up(Out, 128)

    # Tile sizes that divide the padded extents (kept modest: fits v7x 32 MiB
    # scoped VMEM with double-buffered weight streaming).
    tm = min(tm, Bp)
    tn = min(tn, Outp)
    tk = min(tk, Inp)
    Bp = _round_up(Bp, tm)
    Inp = _round_up(Inp, tk)
    Outp = _round_up(Outp, tn)

    x_p = jnp.zeros((Bp, Inp), x.dtype).at[:B, :In].set(x)
    w_p = jnp.zeros((Outp, Inp), weight.dtype).at[:Out, :In].set(weight)
    b_p = jnp.zeros((1, Outp), bias.dtype).at[:, :Out].set(bias.reshape(1, Out))
    ls_p = jnp.zeros((1, Outp), logstd.dtype).at[:, :Out].set(
        logstd.reshape(1, Out))

    grid = (Bp // tm, Outp // tn, Inp // tk)

    mean_p, std_p = pl.pallas_call(
        gaussian_action_kernel,
        out_shape=(jax.ShapeDtypeStruct((Bp, Outp), x.dtype),
                   jax.ShapeDtypeStruct((Bp, Outp), x.dtype)),
        grid_spec=pltpu.PrefetchScalarGridSpec(
            num_scalar_prefetch=0,
            grid=grid,
            in_specs=[
                pl.BlockSpec((tm, tk), lambda i, j, k: (i, k)),   # x
                pl.BlockSpec((tn, tk), lambda i, j, k: (j, k)),   # W (Out, In)
                pl.BlockSpec((1, tn), lambda i, j, k: (0, j)),    # bias row
                pl.BlockSpec((1, tn), lambda i, j, k: (0, j)),    # logstd row
            ],
            out_specs=[
                pl.BlockSpec((tm, tn), lambda i, j, k: (i, j)),   # mean
                pl.BlockSpec((tm, tn), lambda i, j, k: (i, j)),   # std
            ],
            scratch_shapes=[pltpu.VMEM((tm, tn), jnp.float32)]),
        compiler_params=pltpu.CompilerParams(
            dimension_semantics=("parallel", "parallel", "arbitrary")),
    )(x_p, w_p, b_p, ls_p)

    return mean_p[:B, :Out], std_p[:B, :Out]


if __name__ == "__main__":
    key = jax.random.PRNGKey(0)
    B, In, Out = 8, 32, 64

    k = jax.random.split(key, 3)
    x = jax.random.normal(k[0], (B, In), dtype=jnp.float32)

    # fc_mean: kaiming_uniform_(weight, a=1.0) -> U(-bound, bound),
    # bound = sqrt(6 / ((1 + a^2) * fan_in)) = sqrt(3 / In); bias zero-init.
    bound = math.sqrt(3.0 / In)
    weight = jax.random.uniform(k[1], (Out, In), jnp.float32, -bound, bound)
    bias = jnp.zeros((Out,), dtype=jnp.float32)
    # logstd is a learned (1, Out) parameter (zero at init); use a non-trivial
    # value here to exercise the exp/broadcast path.
    logstd = 0.1 * jax.random.normal(k[2], (1, Out), dtype=jnp.float32)

    mean, std = gaussian_action(x, weight, bias, logstd)
    mean = jax.block_until_ready(mean)
    std = jax.block_until_ready(std)

    # pure-JAX reference (what FixedNormal(action_mean, logstd.exp()) carries)
    ref_mean = x @ weight.T + bias
    ref_std = jnp.broadcast_to(jnp.exp(logstd), (B, Out))
    assert jnp.allclose(mean, ref_mean, atol=1e-5, rtol=1e-5), "mean mismatch"
    assert jnp.allclose(std, ref_std, atol=1e-6, rtol=1e-6), "std mismatch"

    # TODO(synk): returning a torch.distributions.Normal object has no Pallas
    # equivalent; the kernel returns its (mean, std) parameterization instead.

    print("KERNEL_OK")
</pallas_src>

<mosaic_0001>
module attributes {stable_mosaic.version = 11 : i64} {
  func.func @gaussian_action_kernel(%arg0: i32, %arg1: i32, %arg2: i32, %arg3: memref<8x128xf32, #tpu.memory_space<vmem>>, %arg4: memref<128x128xf32, #tpu.memory_space<vmem>>, %arg5: memref<1x128xf32, #tpu.memory_space<vmem>>, %arg6: memref<1x128xf32, #tpu.memory_space<vmem>>, %arg7: memref<8x128xf32, #tpu.memory_space<vmem>>, %arg8: memref<8x128xf32, #tpu.memory_space<vmem>>, %arg9: memref<8x128xf32, #tpu.memory_space<vmem>>) attributes {dimension_semantics = [#tpu.dimension_semantics<parallel>, #tpu.dimension_semantics<parallel>, #tpu.dimension_semantics<arbitrary>], iteration_bounds = array<i64: 1, 1, 1>, scalar_prefetch = 0 : i64, scratch_operands = 1 : i64, tpu.core_type = #tpu.core_type<tc>, window_params = [{transform_indices = @transform_0, window_bounds = array<i64: 8, 128>}, {transform_indices = @transform_1, window_bounds = array<i64: 128, 128>}, {transform_indices = @transform_2, window_bounds = array<i64: 1, 128>}, {transform_indices = @transform_3, window_bounds = array<i64: 1, 128>}, {transform_indices = @transform_4, window_bounds = array<i64: 8, 128>}, {transform_indices = @transform_5, window_bounds = array<i64: 8, 128>}]} {
    %c0_i32 = arith.constant 0 : i32
    %0 = arith.cmpi eq, %arg2, %c0_i32 : i32
    %1 = arith.extui %0 : i1 to i32
    %c0_i32_0 = arith.constant 0 : i32
    %2 = arith.cmpi ne, %1, %c0_i32_0 : i32
    scf.if %2 {
      %cst_10 = arith.constant 0.000000e+00 : f32
      %12 = vector.broadcast %cst_10 : f32 to vector<8x128xf32>
      %c0_11 = arith.constant 0 : index
      %c0_12 = arith.constant 0 : index
      %13 = vector.load %arg9[%c0_11, %c0_12] : memref<8x128xf32, #tpu.memory_space<vmem>>, vector<8x128xf32>
      tpu.vector_store %arg9[%c0_11, %c0_12], %12 {strides = array<i32>} : memref<8x128xf32, #tpu.memory_space<vmem>>, vector<8x128xf32>,
    } else {
    }
    %c0 = arith.constant 0 : index
    %c0_1 = arith.constant 0 : index
    %3 = vector.load %arg9[%c0, %c0_1] : memref<8x128xf32, #tpu.memory_space<vmem>>, vector<8x128xf32>
    %c0_2 = arith.constant 0 : index
    %c0_3 = arith.constant 0 : index
    %4 = vector.load %arg3[%c0_2, %c0_3] : memref<8x128xf32, #tpu.memory_space<vmem>>, vector<8x128xf32>
    %c0_4 = arith.constant 0 : index
    %c0_5 = arith.constant 0 : index
    %5 = vector.load %arg4[%c0_4, %c0_5] : memref<128x128xf32, #tpu.memory_space<vmem>>, vector<128x128xf32>
    %cst = arith.constant dense<0.000000e+00> : vector<8x128xf32>
    %6 = tpu.matmul %4, %5, %cst {dimension_numbers = #tpu.dot_dimension_numbers<[1], [1], [0], [0], [0, 0, 1, 0], [], []>} : vector<8x128xf32>, vector<128x128xf32>, vector<8x128xf32> -> vector<8x128xf32>
    %7 = arith.addf %3, %6 : vector<8x128xf32>
    %c0_6 = arith.constant 0 : index
    %c0_7 = arith.constant 0 : index
    %8 = vector.load %arg9[%c0_6, %c0_7] : memref<8x128xf32, #tpu.memory_space<vmem>>, vector<8x128xf32>
    tpu.vector_store %arg9[%c0_6, %c0_7], %7 {strides = array<i32>} : memref<8x128xf32, #tpu.memory_space<vmem>>, vector<8x128xf32>,
    %c0_i32_8 = arith.constant 0 : i32
    %9 = arith.cmpi eq, %arg2, %c0_i32_8 : i32
    %10 = arith.extui %9 : i1 to i32
    %c0_i32_9 = arith.constant 0 : i32
    %11 = arith.cmpi ne, %10, %c0_i32_9 : i32
    scf.if %11 {
      %c0_10 = arith.constant 0 : index
      %c0_11 = arith.constant 0 : index
      %12 = vector.load %arg9[%c0_10, %c0_11] : memref<8x128xf32, #tpu.memory_space<vmem>>, vector<8x128xf32>
      %c0_12 = arith.constant 0 : index
      %c0_13 = arith.constant 0 : index
      %13 = vector.load %arg5[%c0_12, %c0_13] : memref<1x128xf32, #tpu.memory_space<vmem>>, vector<1x128xf32>
      %14 = vector.broadcast %13 : vector<1x128xf32> to vector<8x128xf32>
      %15 = arith.addf %12, %14 : vector<8x128xf32>
      %c0_14 = arith.constant 0 : index
      %c0_15 = arith.constant 0 : index
      %16 = vector.load %arg7[%c0_14, %c0_15] : memref<8x128xf32, #tpu.memory_space<vmem>>, vector<8x128xf32>
      tpu.vector_store %arg7[%c0_14, %c0_15], %15 {strides = array<i32>} : memref<8x128xf32, #tpu.memory_space<vmem>>, vector<8x128xf32>,
      %c0_16 = arith.constant 0 : index
      %c0_17 = arith.constant 0 : index
      %17 = vector.load %arg6[%c0_16, %c0_17] : memref<1x128xf32, #tpu.memory_space<vmem>>, vector<1x128xf32>
      %18 = math.exp %17 : vector<1x128xf32>
      %19 = vector.shape_cast %18 : vector<1x128xf32> to vector<1x128xf32>
      %20 = vector.broadcast %19 : vector<1x128xf32> to vector<8x128xf32>
      %c0_18 = arith.constant 0 : index
      %c0_19 = arith.constant 0 : index
      %21 = vector.load %arg8[%c0_18, %c0_19] : memref<8x128xf32, #tpu.memory_space<vmem>>, vector<8x128xf32>
      tpu.vector_store %arg8[%c0_18, %c0_19], %20 {strides = array<i32>} : memref<8x128xf32, #tpu.memory_space<vmem>>, vector<8x128xf32>,
    } else {
    }
    return
  }
  func.func @transform_0(%arg0: i32, %arg1: i32, %arg2: i32) -> (i32, i32) {
    %c0_i32 = arith.constant 0 : i32
    return %arg0, %arg2 : i32, i32
  }
  func.func @transform_1(%arg0: i32, %arg1: i32, %arg2: i32) -> (i32, i32) {
    %c0_i32 = arith.constant 0 : i32
    return %arg1, %arg2 : i32, i32
  }
  func.func @transform_2(%arg0: i32, %arg1: i32, %arg2: i32) -> (i32, i32) {
    %c0_i32 = arith.constant 0 : i32
    %c0_i32_0 = arith.constant 0 : i32
    return %c0_i32, %arg1 : i32, i32
  }
  func.func @transform_3(%arg0: i32, %arg1: i32, %arg2: i32) -> (i32, i32) {
    %c0_i32 = arith.constant 0 : i32
    %c0_i32_0 = arith.constant 0 : i32
    return %c0_i32, %arg1 : i32, i32
  }
  func.func @transform_4(%arg0: i32, %arg1: i32, %arg2: i32) -> (i32, i32) {
    %c0_i32 = arith.constant 0 : i32
    return %arg0, %arg1 : i32, i32
  }
  func.func @transform_5(%arg0: i32, %arg1: i32, %arg2: i32) -> (i32, i32) {
    %c0_i32 = arith.constant 0 : i32
    return %arg0, %arg1 : i32, i32
  }
}

</mosaic_0001>

<bundles_post_ra>
// kernel: tpu_custom_call.1
= control target key start
LH: loop header
LB: loop body
LE: loop exit
PB: predicated region body
PF: predicated region fallthrough
CT: control target
= control target key end

     0   :  { %11 = vsyncpa [#allocation4], 0  ;;  %s402_s0 = inlined_call_operand.hbm [shape: f32[8,128], index: 0, kind: input, shape index: {}]   ;;  %s403_s1 = inlined_call_operand.hbm [shape: f32[128,128], index: 1, kind: input, shape index: {}]   ;;  %s404_s2 = inlined_call_operand.vmem [shape: f32[1,128], index: 2, kind: input, shape index: {}]   ;;  %s405_s3 = inlined_call_operand.vmem [shape: f32[1,128], index: 3, kind: input, shape index: {}]   ;;  %s406_s4 = inlined_call_operand.hbm [shape: f32[8,128], index: 4, kind: output, shape index: {0}]   ;;  %s407_s5 = inlined_call_operand.hbm [shape: f32[8,128], index: 5, kind: output, shape index: {1}]  }
   0x1   :  { %12 = vsyncpa [#allocation7], 0 }
   0x2   :  { %13 = vsyncpa [#allocation5], 0 }
   0x3   :  { %14 = vsyncpa [#allocation10], 0  ;;  %s346_s18 = smov [#allocation3]   ;;  %s347_s20 = smov [#allocation6]  }
   0x4   :  { %s21_s19 = sshll.u32 %s346_s18, 4  ;;  %s30_s21 = sshll.u32 %s347_s20, 4  ;;  %s22_s19 = int_to_ptr.vmem [resolvable:$true] %s21_s19  ;;  %s31_s21 = int_to_ptr.vmem [resolvable:$true] %s30_s21 }
   0x5   :  { %s266_s22 = scalar_lea.vmem %s22_s19, 128  ;;  %p271_p1 = scmp.lt.s32.totalorder %s22_s19, %s22_s19 }
   0x6   :  { %p267_p0 = scmp.ne.s32.totalorder %s22_s19, %s266_s22  ;;  %p272_p2 = scmp.lt.s32.totalorder %s266_s22, %s266_s22 }
   0x8   :  { %p273_p3 = por %p272_p2, %p271_p1 }
   0xa   :  { %p274_p4 = pnand %p273_p3, %p267_p0 }
   0xc   :  { %277 = shalt.err (!%p274_p4)
}
   0xd   :  { %24 = dma.hbm_to_vmem [thread:$0]  %s402_s0, 128, %s22_s19, [#allocation4]  }
   0xe   :  { %s286_s25 = scalar_lea.vmem %s31_s21, 2048  ;;  %p291_p6 = scmp.lt.s32.totalorder %s31_s21, %s31_s21 }
   0xf   :  { %p287_p5 = scmp.ne.s32.totalorder %s31_s21, %s286_s25  ;;  %p292_p7 = scmp.lt.s32.totalorder %s286_s25, %s286_s25 }
  0x11   :  { %p293_p8 = por %p292_p7, %p291_p6 }
  0x13   :  { %p294_p9 = pnand %p293_p8, %p287_p5 }
  0x15   :  { %297 = shalt.err (!%p294_p9)
}
  0x16   :  { %s348_s26 = smov 128   ;;  %s349_s27 = smov 8  }
  0x17   :  { %36 = dma.hbm_to_vmem [thread:$0]  %s403_s1, 2048, %s31_s21, [#allocation7], %s348_s26, %s348_s26, %s349_s27  }
  0x18   :  { %338 = dma.done.wait [#allocation4], 128  }
  0x19   :  { %339 = vsyncadd [#allocation4], 4294967168 }
  0x1a   :  { %340 = dma.done.wait [#allocation7], 2048  }
  0x1b   :  { %341 = vsyncadd [#allocation7], 4294965248  ;;  %v350_v0 = vmov 0.0   ;;  %vm351_vm0 = vmmov 0   ;;  %v69_v1 = vld [vmem:[#allocation6 + $0x78] sm:$0xff]  ;;  %v68_v2 = vld [vmem:[#allocation6 + $0x70] sm:$0xff]  ;;  %v159_v20 = vlaneseq }
  0x1c   :  { %213 = vmatprep.subr.mxu0 %v350_v0  ;;  %245 = vmatprep.mubr.msk.f32.mxu0 %vm351_vm0, %v350_v0  ;;  %v67_v3 = vld [vmem:[#allocation6 + $0x68] sm:$0xff]  ;;  %v66_v4 = vld [vmem:[#allocation6 + $0x60] sm:$0xff]  ;;  %v65_v5 = vld [vmem:[#allocation6 + $0x58] sm:$0xff]  ;;  %s352_s30 = smov [#allocation9]  }
  0x1d   :  { %214 = vmatpush3.xpose.msra.mxu0 %v69_v1  ;;  %v64_v6 = vld [vmem:[#allocation6 + $0x50] sm:$0xff]  ;;  %v63_v7 = vld [vmem:[#allocation6 + $0x48] sm:$0xff]  ;;  %v62_v8 = vld [vmem:[#allocation6 + $0x40] sm:$0xff]  ;;  %v160_v21 = vshrl.u32 %v159_v20, 7  ;;  %s181_s6 = sshll.u32 %s352_s30, 4  ;;  %s182_s6 = int_to_ptr.vmem [resolvable:$true] %s181_s6 }
  0x1e   :  { %215 = vmatprep.subr.mxu0 %v350_v0  ;;  %v61_v9 = vld [vmem:[#allocation6 + $0x38] sm:$0xff]  ;;  %v60_v10 = vld [vmem:[#allocation6 + $0x30] sm:$0xff]  ;;  %v59_v11 = vld [vmem:[#allocation6 + $0x28] sm:$0xff]  ;;  %s298_s7 = scalar_lea.vmem %s182_s6, 128  ;;  %p303_p11 = scmp.lt.s32.totalorder %s182_s6, %s182_s6 }
  0x1f   :  { %v58_v12 = vld [vmem:[#allocation6 + $0x20] sm:$0xff]  ;;  %v57_v13 = vld [vmem:[#allocation6 + $0x18] sm:$0xff]  ;;  %v56_v14 = vld [vmem:[#allocation6 + $0x10] sm:$0xff]  ;;  %v161_v22 = vsub.s32 0, %v160_v21  ;;  %p299_p10 = scmp.ne.s32.totalorder %s182_s6, %s298_s7  ;;  %p304_p12 = scmp.lt.s32.totalorder %s298_s7, %s298_s7 }
  0x20   :  { %v55_v15 = vld [vmem:[#allocation6 + $0x8] sm:$0xff]  ;;  %v54_v16 = vld [vmem:[#allocation6] sm:$0xff]  ;;  %v53_v17 = vld [vmem:[#allocation3] sm:$0xff] }
  0x21   :  { %216 = vmatpush3.xpose.msra.mxu0 %v68_v2  ;;  %v155_v18 = vld [vmem:[%s405_s3] sm:$0x1]  ;;  %p305_p13 = por %p304_p12, %p303_p11 }
  0x22   :  { %217 = vmatprep.subr.mxu0 %v350_v0  ;;  %v156_v19 = vmul.f32 1.442695, %v155_v18 }
  0x23   :  { %p306_p0 = pnand %p305_p13, %p299_p10 }
  0x24   :  { %256 = vpow2.f32 %v156_v19 }
  0x25   :  { %218 = vmatpush3.xpose.msra.mxu0 %v67_v3 }
  0x26   :  { %219 = vmatprep.subr.mxu0 %v350_v0 }
  0x29   :  { %220 = vmatpush3.xpose.msra.mxu0 %v66_v4 }
  0x2a   :  { %221 = vmatprep.subr.mxu0 %v350_v0 }
  0x2d   :  { %222 = vmatpush3.xpose.msra.mxu0 %v65_v5 }
  0x2e   :  { %223 = vmatprep.subr.mxu0 %v350_v0 }
  0x31   :  { %224 = vmatpush3.xpose.msra.mxu0 %v64_v6  ;;  %v257_v23 = vpop.eup %256 }
  0x32   :  { %225 = vmatprep.subr.mxu0 %v350_v0  ;;  %v162_v24 = vrot.slane %v257_v23, %v161_v22 }
  0x34   :  { %164 = vst [vmem:[#allocation9] sm:$0xff] %v162_v24 }
  0x35   :  { %226 = vmatpush3.xpose.msra.mxu0 %v63_v7 }
  0x36   :  { %227 = vmatprep.subr.mxu0 %v350_v0 }
  0x39   :  { %228 = vmatpush3.xpose.msra.mxu0 %v62_v8 }
  0x3a   :  { %229 = vmatprep.subr.mxu0 %v350_v0 }
  0x3d   :  { %230 = vmatpush3.xpose.msra.mxu0 %v61_v9 }
  0x3e   :  { %231 = vmatprep.subr.mxu0 %v350_v0 }
  0x41   :  { %232 = vmatpush3.xpose.msra.mxu0 %v60_v10 }
  0x42   :  { %233 = vmatprep.subr.mxu0 %v350_v0 }
  0x45   :  { %234 = vmatpush3.xpose.msra.mxu0 %v59_v11 }
  0x46   :  { %235 = vmatprep.subr.mxu0 %v350_v0 }
  0x49   :  { %236 = vmatpush3.xpose.msra.mxu0 %v58_v12 }
  0x4a   :  { %237 = vmatprep.subr.mxu0 %v350_v0 }
  0x4d   :  { %238 = vmatpush3.xpose.msra.mxu0 %v57_v13 }
  0x4e   :  { %239 = vmatprep.subr.mxu0 %v350_v0 }
  0x51   :  { %240 = vmatpush3.xpose.msra.mxu0 %v56_v14 }
  0x52   :  { %241 = vmatprep.subr.mxu0 %v350_v0 }
  0x55   :  { %242 = vmatpush3.xpose.msra.mxu0 %v55_v15 }
  0x56   :  { %243 = vmatprep.subr.mxu0 %v350_v0 }
  0x59   :  { %244 = vmatpush3.xpose.msra.mxu0 %v54_v16 }
  0x5c   :  { %246 = vmatmul.mubr.f32.vlgmr.msra.gmra.mxu0 %v53_v17 }
  0x5d   :  { %309 = shalt.err (!%p306_p0)
}
  0x5e   :  { %184 = dma.vmem_to_hbm [thread:$0]  %s182_s6, 128, %s407_s5, [#allocation10]   ;;  %v195_v25 = vld [vmem:[%s404_s2] ss:$0 sm:$0xff] }
  0x5f   :  { %s353_s11 = smov [#allocation8]  }
  0x60   :  { %s171_s12 = sshll.u32 %s353_s11, 4  ;;  %s172_s12 = int_to_ptr.vmem [resolvable:$true] %s171_s12 }
  0x61   :  { %s318_s13 = scalar_lea.vmem %s172_s12, 128  ;;  %p323_p2 = scmp.lt.s32.totalorder %s172_s12, %s172_s12 }
  0x62   :  { %p319_p1 = scmp.ne.s32.totalorder %s172_s12, %s318_s13  ;;  %p324_p3 = scmp.lt.s32.totalorder %s318_s13, %s318_s13 }
  0x64   :  { %p325_p4 = por %p324_p3, %p323_p2 }
  0x66   :  { %p326_p5 = pnand %p325_p4, %p319_p1 }
 0x11c   :  { %v136_v26 = vpop.f32.mrf.mxu0 }
 0x11d   :  { %v153_v27 = vadd.f32 %v195_v25, %v136_v26 }
 0x11e   :  { %v247_v28 = vpop.f32.mrf.mxu0 }
 0x11f   :  { %154 = vst [vmem:[#allocation8] sm:$0xff] %v153_v27 }
 0x120   :  { %329 = shalt.err (!%p326_p5)
}
 0x121   :  { %174 = dma.vmem_to_hbm [thread:$0]  %s172_s12, 128, %s406_s4, [#allocation5]  }
 0x122   :  { %342 = dma.done.wait [#allocation5], 128  }
 0x123   :  { %343 = vsyncadd [#allocation5], 4294967168 }
 0x124   :  { %344 = dma.done.wait [#allocation10], 128  }
 0x125   :  { %345 = vsyncadd [#allocation10], 4294967168 }
 0x126   :  { %191 = vsyncpa [#allocation4], 1 }
 0x127   :  { %192 = vsyncpa [#allocation7], 1 }
 0x128   :  { %193 = vsyncpa [#allocation5], 1 }
 0x129   :  { %194 = vsyncpa [#allocation10], 1 }

</bundles_post_ra>
